<compile_context>
chip_gen: v6e
topology: v6e:2x2x1
jax: 0.10.0
libtpu: 0.0.40
codegen_flags: <defaults>
</compile_context>

<pallas_src>
import functools

import numpy as np
import jax
import jax.numpy as jnp
from jax.experimental import pallas as pl
from jax.experimental.pallas import tpu as pltpu


# ---------------------------------------------------------------------------
# Kernel
# ---------------------------------------------------------------------------
def _upsample_kernel(x_ref, m_ref, o_ref, *, upscale: int, fold: int):
    x = x_ref[...]                                    # (Rb, F*W)
    if jnp.issubdtype(x.dtype, jnp.floating):
        m = m_ref[...]                                # (F*W, F*u*u*W) 0/1 matrix (bf16)
        if x.dtype == jnp.bfloat16:
            # bf16 x 0/1-bf16 with f32 accumulation is exact.
            y = jnp.dot(x, m, preferred_element_type=jnp.float32)
        else:
            # Exact f32/f16 path: split into 3 bf16 parts with hi+mid+lo == x exactly,
            # run 3 bf16 MXU matmuls against the 0/1 matrix, re-sum in f32 (all exact).
            xf = x.astype(jnp.float32)
            hi = xf.astype(jnp.bfloat16)
            r1 = xf - hi.astype(jnp.float32)
            mid = r1.astype(jnp.bfloat16)
            lo = (r1 - mid.astype(jnp.float32)).astype(jnp.bfloat16)
            y = (jnp.dot(hi, m, preferred_element_type=jnp.float32)
                 + jnp.dot(mid, m, preferred_element_type=jnp.float32)
                 + jnp.dot(lo, m, preferred_element_type=jnp.float32))
        o_ref[...] = y.astype(o_ref.dtype)
    else:
        # Exact fallback for non-float dtypes (VPU/XLU broadcast+reshape).
        rb, fw = x.shape
        u = upscale
        w = fw // fold
        xr = x.reshape(rb, fold, 1, w, 1)
        o_ref[...] = jnp.broadcast_to(
            xr, (rb, fold, u, w, u)).reshape(rb, fold * u * w * u)


# ---------------------------------------------------------------------------
# Host-side helpers (all static / trace-time)
# ---------------------------------------------------------------------------
def _replication_matrix(w: int, u: int, fold: int, dtype=jnp.bfloat16):
    """0/1 matrix M of shape (fold*w, fold*u*w*u) with (x_rows @ M) == upsampled rows."""
    j = np.arange(u * w * u)
    src = (j % (w * u)) // u                           # source column within one sub-row
    m1 = (src[None, :] == np.arange(w)[:, None]).astype(np.float32)   # (w, u*w*u)
    m = np.kron(np.eye(fold, dtype=np.float32), m1)                    # block-diagonal
    return jnp.asarray(m, dtype=dtype)


def _choose_fold(num_rows: int, w: int, u: int, max_fold_cols: int = 256) -> int:
    """Smallest divisor F of num_rows making the output lane width F*u*u*w a multiple
    of 128 (else >=128), while keeping the matmul contraction length F*w small."""
    lane = u * u * w
    f_cap = min(num_rows, max(1, max_fold_cols // max(1, w)))
    best_ge = None
    best_any = 1
    for f in range(1, f_cap + 1):
        if num_rows % f != 0:
            continue
        best_any = f
        if (f * lane) % 128 == 0:
            return f
        if best_ge is None and f * lane >= 128:
            best_ge = f
    return best_ge if best_ge is not None else best_any


def _choose_rows_per_block(num_rows: int, out_row_bytes: int,
                           target_bytes: int = 4 << 20) -> int:
    """Row-band size: ~4 MiB output tiles (double-buffered totals fit every gen's scoped
    VMEM), multiple of 8 (or the full extent), and >=2 grid steps when there is work."""
    rb = max(1, target_bytes // max(1, out_row_bytes))
    if rb >= num_rows:
        if num_rows >= 16:
            rb = ((num_rows // 2 + 7) // 8) * 8        # split for megacore sharding
            rb = min(rb, num_rows)
        else:
            rb = num_rows
    else:
        rb = max(8, (rb // 8) * 8)
    return int(min(rb, num_rows))


# ---------------------------------------------------------------------------
# Public entry point
# ---------------------------------------------------------------------------
def upsample_deterministic(x: jax.Array, upscale: int = 2) -> jax.Array:
    """x: (B, C, H, W) -> (B, C, H*upscale, W*upscale), deterministic nearest-neighbor."""
    B, C, H, W = x.shape
    u = int(upscale)
    if u == 1:
        return x

    rows = B * C * H                                   # total input rows, row-major order
    fold = _choose_fold(rows, W, u)
    n_rows = rows // fold
    in_cols = fold * W
    out_cols = fold * u * u * W                        # lane width of the stored output

    x2 = x.reshape(n_rows, in_cols)                    # free: same contiguous layout
    m = _replication_matrix(W, u, fold)                # tiny constant, stays VMEM-resident

    rows_per_block = _choose_rows_per_block(n_rows, out_cols * x.dtype.itemsize)
    grid = (pl.cdiv(n_rows, rows_per_block),)

    out2 = pl.pallas_call(
        functools.partial(_upsample_kernel, upscale=u, fold=fold),
        out_shape=jax.ShapeDtypeStruct((n_rows, out_cols), x.dtype),
        grid=grid,
        in_specs=[
            pl.BlockSpec((rows_per_block, in_cols), lambda i: (i, 0)),
            pl.BlockSpec((in_cols, out_cols), lambda i: (0, 0)),   # constant -> resident
        ],
        out_specs=pl.BlockSpec((rows_per_block, out_cols), lambda i: (i, 0)),
        compiler_params=pltpu.CompilerParams(
            dimension_semantics=("parallel",)),
    )(x2, m)

    return out2.reshape(B, C, H * u, W * u)            # free: same contiguous layout


class UpsampleDeterministic:
    """JAX/Pallas port of the PyTorch UpsampleDeterministic module (no params)."""

    def __init__(self, upscale: int = 2):
        self.upscale = upscale

    def __call__(self, x: jax.Array) -> jax.Array:
        return upsample_deterministic(x, self.upscale)


def _reference(x: jax.Array, upscale: int) -> jax.Array:
    # Pure-JAX reference matching the PyTorch expand+reshape semantics.
    B, C, H, W = x.shape
    y = jnp.broadcast_to(
        x[:, :, :, None, :, None], (B, C, H, upscale, W, upscale)
    ).reshape(B, C, H * upscale, W * upscale)
    return y


if __name__ == "__main__":
    key = jax.random.PRNGKey(0)
    B, C, H, W = 2, 4, 16, 16
    x = jax.random.normal(key, (B, C, H, W), dtype=jnp.float32)

    module = UpsampleDeterministic(upscale=2)
    out = jax.block_until_ready(module(x))

    ref = _reference(x, 2)
    assert out.shape == (B, C, 2 * H, 2 * W), out.shape
    assert out.dtype == x.dtype
    assert jnp.array_equal(out, ref), "Pallas output mismatch vs reference"

    print("KERNEL_OK")
</pallas_src>

<mosaic_0001>
module attributes {stable_mosaic.version = 11 : i64} {
  func.func @_upsample_kernel(%arg0: i32, %arg1: memref<32x32xf32, #tpu.memory_space<vmem>>, %arg2: memref<32x128xbf16, #tpu.memory_space<vmem>>, %arg3: memref<32x128xf32, #tpu.memory_space<vmem>>) attributes {dimension_semantics = [#tpu.dimension_semantics<parallel>], iteration_bounds = array<i64: 2>, scalar_prefetch = 0 : i64, scratch_operands = 0 : i64, tpu.core_type = #tpu.core_type<tc>, window_params = [{transform_indices = @transform_0, window_bounds = array<i64: 32, 32>}, {pipeline_mode = #tpu.pipeline_mode<synchronous>, transform_indices = @transform_1, window_bounds = array<i64: 32, 128>}, {transform_indices = @transform_2, window_bounds = array<i64: 32, 128>}]} {
    %c0 = arith.constant 0 : index
    %c0_0 = arith.constant 0 : index
    %0 = vector.load %arg1[%c0, %c0_0] : memref<32x32xf32, #tpu.memory_space<vmem>>, vector<32x32xf32>
    %c0_1 = arith.constant 0 : index
    %c0_2 = arith.constant 0 : index
    %1 = vector.load %arg2[%c0_1, %c0_2] : memref<32x128xbf16, #tpu.memory_space<vmem>>, vector<32x128xbf16>
    %2 = arith.truncf %0 : vector<32x32xf32> to vector<32x32xbf16>
    %3 = arith.extf %2 : vector<32x32xbf16> to vector<32x32xf32>
    %4 = arith.subf %0, %3 : vector<32x32xf32>
    %5 = arith.truncf %4 : vector<32x32xf32> to vector<32x32xbf16>
    %6 = arith.extf %5 : vector<32x32xbf16> to vector<32x32xf32>
    %7 = arith.subf %4, %6 : vector<32x32xf32>
    %8 = arith.truncf %7 : vector<32x32xf32> to vector<32x32xbf16>
    %cst = arith.constant dense<0.000000e+00> : vector<32x128xf32>
    %9 = tpu.matmul %2, %1, %cst {dimension_numbers = #tpu.dot_dimension_numbers<[1], [0], [0], [1], [0, 0, 1, 1], [], []>} : vector<32x32xbf16>, vector<32x128xbf16>, vector<32x128xf32> -> vector<32x128xf32>
    %cst_3 = arith.constant dense<0.000000e+00> : vector<32x128xf32>
    %10 = tpu.matmul %5, %1, %cst_3 {dimension_numbers = #tpu.dot_dimension_numbers<[1], [0], [0], [1], [0, 0, 1, 1], [], []>} : vector<32x32xbf16>, vector<32x128xbf16>, vector<32x128xf32> -> vector<32x128xf32>
    %11 = arith.addf %9, %10 : vector<32x128xf32>
    %cst_4 = arith.constant dense<0.000000e+00> : vector<32x128xf32>
    %12 = tpu.matmul %8, %1, %cst_4 {dimension_numbers = #tpu.dot_dimension_numbers<[1], [0], [0], [1], [0, 0, 1, 1], [], []>} : vector<32x32xbf16>, vector<32x128xbf16>, vector<32x128xf32> -> vector<32x128xf32>
    %13 = arith.addf %11, %12 : vector<32x128xf32>
    %c0_5 = arith.constant 0 : index
    %c0_6 = arith.constant 0 : index
    %14 = vector.load %arg3[%c0_5, %c0_6] : memref<32x128xf32, #tpu.memory_space<vmem>>, vector<32x128xf32>
    tpu.vector_store %arg3[%c0_5, %c0_6], %13 {strides = array<i32>} : memref<32x128xf32, #tpu.memory_space<vmem>>, vector<32x128xf32>,
    return
  }
  func.func @transform_0(%arg0: i32) -> (i32, i32) {
    %c0_i32 = arith.constant 0 : i32
    %c0_i32_0 = arith.constant 0 : i32
    return %arg0, %c0_i32 : i32, i32
  }
  func.func @transform_1(%arg0: i32) -> (i32, i32) {
    %c0_i32 = arith.constant 0 : i32
    %c0_i32_0 = arith.constant 0 : i32
    %c0_i32_1 = arith.constant 0 : i32
    return %c0_i32, %c0_i32_0 : i32, i32
  }
  func.func @transform_2(%arg0: i32) -> (i32, i32) {
    %c0_i32 = arith.constant 0 : i32
    %c0_i32_0 = arith.constant 0 : i32
    return %arg0, %c0_i32 : i32, i32
  }
}

</mosaic_0001>

<bundles_post_ra>
// kernel: tpu_custom_call.1
= control target key start
LH: loop header
LB: loop body
LE: loop exit
PB: predicated region body
PF: predicated region fallthrough
CT: control target
= control target key end

     0   :  { %7 = vsyncpa [#allocation3], 0  ;;  %s731_s0 = inlined_call_operand.vmem [shape: f32[64,32], index: 0, kind: input, shape index: {}]   ;;  %s732_s1 = inlined_call_operand.vmem [shape: bf16[32,128], index: 1, kind: input, shape index: {}]   ;;  %s733_s2 = inlined_call_operand.hbm [shape: f32[64,128], index: 2, kind: output, shape index: {}]  }
   0x1   :  { %9 = vsyncpa [#allocation3 + $0x1], 0  ;;  %s618_s9 = smov 0   ;;  %s620_s10 = smov 0  }
   0x2   :  { %s622_s11 = smov 0   ;;  %s624_s12 = smov 0  }
   0x3 LB: > { %s639_s13 = sadd.s32 4294967295, %s598_s12   ;;  %s438_s14 = sadd.s32 4294967294, %s598_s12   ;;  %s598_s12 = sphi %s624_s12, %s739_s12   ;;  %s594_s11 = sphi %s622_s11, %s738_s11   ;;  %s590_s10 = sphi %s620_s10, %s737_s10   ;;  %s586_s9 = sphi %s618_s9, %s736_s9  }
   0x4   : > { %s643_s15 = sadd.s32 1, %s598_s12   ;;  %s69_s16 = sadd.s32 1, %s594_s11 }
   0x5   : > { %s66_s17 = ssub.s32 %s598_s12, %s643_s15  ;;  %p79_p0 = scmp.ne.s32.totalorder %s594_s11, %s590_s10 }
   0x6   : > { %p67_p1 = scmp.eq.s32.totalorder %s66_s17, 0  ;;  %p80_p2 = scmp.eq.s32.totalorder %s639_s13, 1 }
   0x7   : > { %p85_p3 = scmp.ne.s32.totalorder %s590_s10, %s586_s9  ;;  %p86_p4 = scmp.eq.s32.totalorder %s438_s14, 1 }
   0x8   : > { %s654_s18 = scalar_select %p67_p1, %s594_s11, %s69_s16  }
   0x9   : > { %p656_p5 = por %p80_p2, %p79_p0  ;;  %p660_p6 = por %p86_p4, %p85_p3 }
   0xa   : > { %p441_p7 = scmp.ge.s32.totalorder %s598_s12, 1  ;;  %p116_p8 = scmp.lt.s32.totalorder %s598_s12, 3 }
   0xc   : > { %p117_p9 = pnand %p441_p7, %p116_p8 }
   0xd   : > { %s443_s23 = sshll.u32 (!%p117_p9), %s639_s13, 2  ;;  %s135_s30 = sand.u32 (!%p117_p9), 1, %s590_s10  }
   0xe   : > { %120 = sbr.rel (%p117_p9) target bundleno = 255 (0xff), region = 28  ;;  %p139_p10 = scmp.lt.s32.totalorder (!%p117_p9), %s443_s23, 7 }
   0xf   : > { %s442_s3 = sshll.u32 (!%p117_p9), %s135_s30, 5  ;;  %s458_s6 = sshll.u32 (!%p117_p9), %s639_s13, 9 }
  0x10   : > { %s137_s4 = scalar_lea.vmem (!%p117_p9), [#allocation2], %s442_s3  ;;  %s689_s14 = scalar_lea.hbm (!%p117_p9), %s733_s2, %s458_s6 }
  0x11   : > { %s376_s5 = sshll.u32 (!%p117_p9), %s137_s4, 4  ;;  %s691_s16 = scalar_lea.sflag (!%p117_p9), [#allocation3], %s135_s30  ;;  %s684_s5 = int_to_ptr.vmem [resolvable:$true] %s376_s5 }
  0x12   : > { %s538_s13 = scalar_lea.vmem (!%p117_p9), %s684_s5, 512  ;;  %s600_s17 = smov (!%p117_p9), [#allocation2]  }
  0x13   : > { %v536_v0 = vld [vmem:[%s732_s1 + $0x8] sm:$0xff]   ;;  %v537_v1 = vld [vmem:[%s732_s1] sm:$0xff]   ;;  %s741_s23 = smov (!%p139_p10, %s443_s23), 7  ;;  %vm188_vm0 = vcmask 261120   ;;  %p539_p11 = scmp.ne.s32.totalorder %s684_s5, %s538_s13 }
  0x14   : > { %471 = vmatprep.subr.bf16.mxu0 %v536_v0  ;;  %479 = vmatprep.subr.bf16.mxu1 %v536_v0  ;;  %s444_s26 = sshll.u32 %s741_s23, 3  ;;  %s542_s21 = sshll.u32 %s600_s17, 4  ;;  %s543_s21 = int_to_ptr.vmem [resolvable:$false] %s542_s21 }
  0x15   : > { %472 = vmatpush3.bf16.msra.mxu0 %v536_v0  ;;  %480 = vmatpush3.bf16.msra.mxu1 %v536_v0  ;;  %s142_s29 = scalar_lea.vmem %s731_s0, %s444_s26  ;;  %p540_p12 = pnand %p539_p11, %p656_p5 }
  0x16   : > { %473 = vmatprep.subr.bf16.mxu0 %v537_v1  ;;  %481 = vmatprep.subr.bf16.mxu1 %v537_v1  ;;  %v146_v2 = vld [vmem:[%s142_s29] sm:$0xff]  ;;  %v147_v3 = vld [vmem:[%s142_s29 + $0x8] sm:$0xff]  ;;  %v148_v4 = vld [vmem:[%s142_s29 + $0x10] sm:$0xff]  ;;  %s544_s22 = scalar_lea.vmem %s543_s21, 1024  ;;  %p545_p0 = scmp.lt.s32.totalorder %s684_s5, %s543_s21 }
  0x17   : > { %v154_v5 = vpack.c.bf16 %v147_v3, %v146_v2  ;;  %v149_v6 = vld [vmem:[%s142_s29 + $0x18] sm:$0xff]  ;;  %p541_p13 = pneg %p540_p12  ;;  %p546_p1 = scmp.lt.s32.totalorder %s544_s22, %s538_s13 }
  0x18   : > { %v155_v7 = vpack.c.bf16 %v149_v6, %v148_v4 }
  0x19   : > { %474 = vmatpush3.bf16.msra.mxu0 %v537_v1  ;;  %482 = vmatpush3.bf16.msra.mxu1 %v537_v1  ;;  %v156_v8 = vunpack.c.l.bf16 %v154_v5  ;;  %v157_v9 = vunpack.c.h.bf16 %v154_v5  ;;  %p547_p2 = por %p546_p1, %p545_p0 }
  0x1a   : > { %487 = vmatprep.subr.bf16.mxu0 %v536_v0  ;;  %483 = vmatprep.mubr.msk.bf16.mxu1 %vm188_vm0, %v154_v5  ;;  %v158_v10 = vunpack.c.l.bf16 %v155_v7  ;;  %v159_v11 = vunpack.c.h.bf16 %v155_v7 }
  0x1b   : > { %v160_v12 = vsub.f32 %v146_v2, %v156_v8  ;;  %v161_v13 = vsub.f32 %v147_v3, %v157_v9  ;;  %p548_p3 = pnand %p547_p2, %p541_p13 }
  0x1c   : > { %484 = vmatmul.mubr.msk.bf16.vlgmr.msra.gmra.mxu1 %vm188_vm0, %v155_v7  ;;  %v162_v14 = vsub.f32 %v148_v4, %v158_v10  ;;  %v163_v15 = vsub.f32 %v149_v6, %v159_v11 }
  0x1d   : > { %v164_v16 = vpack.c.bf16 %v161_v13, %v160_v12 }
  0x1e   : > { %v165_v17 = vpack.c.bf16 %v163_v15, %v162_v14 }
  0x1f   : > { %v166_v18 = vunpack.c.l.bf16 %v164_v16  ;;  %v167_v19 = vunpack.c.h.bf16 %v164_v16  ;;  %475 = vmatprep.mubr.msk.bf16.mxu0 %vm188_vm0, %v164_v16 }
  0x20   : > { %v168_v20 = vunpack.c.l.bf16 %v165_v17  ;;  %v169_v21 = vunpack.c.h.bf16 %v165_v17  ;;  %476 = vmatmul.mubr.msk.bf16.vlgmr.msra.gmra.mxu0 %vm188_vm0, %v165_v17 }
  0x21   : > { %v170_v22 = vsub.f32 %v160_v12, %v166_v18  ;;  %v171_v23 = vsub.f32 %v161_v13, %v167_v19  ;;  %488 = vmatpush3.bf16.msra.mxu0 %v536_v0 }
  0x22   : > { %v172_v24 = vsub.f32 %v162_v14, %v168_v20  ;;  %v173_v25 = vsub.f32 %v163_v15, %v169_v21  ;;  %489 = vmatprep.subr.bf16.mxu0 %v537_v1 }
  0x23   : > { %v174_v26 = vpack.c.bf16 %v171_v23, %v170_v22 }
  0x24   : > { %v175_v27 = vpack.c.bf16 %v173_v25, %v172_v24 }
  0x25   : > { %490 = vmatpush3.bf16.msra.mxu0 %v537_v1  ;;  %491 = vmatprep.mubr.msk.bf16.mxu0 %vm188_vm0, %v174_v26 }
  0x28   : > { %492 = vmatmul.mubr.msk.bf16.vlgmr.msra.gmra.mxu0 %vm188_vm0, %v175_v27 }
  0xdc   : > { %v485_v28 = vpop.f32.mrf.mxu1 }
  0xde   : > { %v284_v31 = vpop.f32.mrf.mxu1 }
  0xe0   : > { %v477_v29 = vpop.f32.mrf.mxu0  ;;  %v486_v33 = vpop.f32.mrf.mxu1 }
  0xe1   : > { %v293_v35 = vadd.f32 %v485_v28, %v477_v29 }
  0xe2   : > { %v229_v30 = vpop.f32.mrf.mxu0  ;;  %v287_v39 = vpop.f32.mrf.mxu1 }
  0xe3   : > { %v285_v37 = vadd.f32 %v284_v31, %v229_v30 }
  0xe4   : > { %v478_v32 = vpop.f32.mrf.mxu0 }
  0xe5   : > { %v296_v41 = vadd.f32 %v486_v33, %v478_v32 }
  0xe6   : > { %v232_v34 = vpop.f32.mrf.mxu0 }
  0xe7   : > { %v288_v44 = vadd.f32 %v287_v39, %v232_v34 }
  0xe8   : > { %v493_v36 = vpop.f32.mrf.mxu0 }
  0xe9   : > { %v356_v38 = vadd.f32 %v493_v36, %v293_v35 }
  0xea   : > { %v339_v40 = vpop.f32.mrf.mxu0 }
  0xeb   : > { %360 = vst [vmem:[%s137_s4 + $0x10] sm:$0xff] %v356_v38  ;;  %v354_v42 = vadd.f32 %v339_v40, %v285_v37 }
  0xec   : > { %v494_v43 = vpop.f32.mrf.mxu0 }
  0xed   : > { %358 = vst [vmem:[%s137_s4] sm:$0xff] %v354_v42  ;;  %v357_v45 = vadd.f32 %v494_v43, %v296_v41 }
  0xee   : > { %v342_v46 = vpop.f32.mrf.mxu0 }
  0xef   : > { %361 = vst [vmem:[%s137_s4 + $0x18] sm:$0xff] %v357_v45  ;;  %v355_v47 = vadd.f32 %v342_v46, %v288_v44 }
  0xf1   : > { %359 = vst [vmem:[%s137_s4 + $0x8] sm:$0xff] %v355_v47 }
  0xf2   : > { %551 = shalt.err (!%p548_p3)
}
  0xf3   : > { %s552_s23 = scalar_lea.hbm %s689_s14, 512  ;;  %s556_s26 = scalar_lea.hbm %s733_s2, 1024 }
  0xf4   : > { %p553_p4 = scmp.ne.s32.totalorder %s689_s14, %s552_s23  ;;  %p557_p9 = scmp.lt.s32.totalorder %s689_s14, %s733_s2 }
  0xf5   : > { %p558_p10 = scmp.lt.s32.totalorder %s556_s26, %s552_s23 }
  0xf6   : > { %p554_p7 = pnand %p553_p4, %p656_p5 }
  0xf7   : > { %p559_p11 = por %p558_p10, %p557_p9 }
  0xf8   : > { %p555_p8 = pneg %p554_p7 }
  0xfa   : > { %p560_p12 = pnand %p559_p11, %p555_p8 }
  0xfc   : > { %563 = shalt.err (!%p560_p12)
}
  0xfd   : > { %s601_s29 = smov 128   ;;  %s602_s30 = smov 8  }
  0xfe   : > { %495 = dma.vmem_to_hbm [thread:$0]  (%p656_p5), %s684_s5, 512, %s689_s14, %s691_s16, %s601_s29, %s601_s29, %s602_s30  }
  0xff PF: > { %p501_p13 = scmp.ge.s32.totalorder %s598_s12, 2  ;;  %s391_s3 = sand.u32 1, %s586_s9  }
 0x100   : > { %s392_s4 = scalar_lea.sflag [#allocation3], %s391_s3 }
 0x101   : > { %p498_p0 = pnand %p501_p13, %p660_p6 }
 0x103   : > { %p499_p1 = pneg %p498_p0 }
 0x105   : > { %581 = dma.done.wait (%p499_p1), %s392_s4, 512  }
 0x106   : > { %583 = vsyncadd (%p499_p1), %s392_s4, 4294966784  ;;  %p12_p2 = scmp.ge.s32.totalorder %s643_s15, 4   ;;  %s736_s9 = smov %s590_s10 }
 0x107   : > { %s737_s10 = smov %s594_s11  ;;  %s738_s11 = smov %s654_s18 }
 0x108   : > { %s739_s12 = smov %s643_s15  ;;  %14 = sbr.rel (!%p12_p2) target bundleno = 3 (0x3), region = 63 }
 0x10d   :  { %397 = vsyncpa [#allocation3], 1 }
 0x10e   :  { %399 = vsyncpa [#allocation3 + $0x1], 1 }

</bundles_post_ra>
